<compile_context>
chip_gen: v7x
topology: tpu7x:2x2x1
jax: 0.10.0
libtpu: 0.0.40
codegen_flags: <defaults>
</compile_context>

<pallas_src>
import functools

import jax
import jax.numpy as jnp
from jax.experimental import pallas as pl
from jax.experimental.pallas import tpu as pltpu


def _highway_kernel(x_ref, w_ref, b_ref, o_ref, carry_ref, *,
                    k, delta, d, left_pad):
    # x_ref:     (1, d, TT)    current non-overlapping input block (block t)
    # w_ref:     (2d, k*d)     fused conv taps (compute dtype)
    # b_ref:     (2d, 1)       conv bias (f32)
    # o_ref:     (1, d, TT)    output tile t-1 (written when t >= 1)
    # carry_ref: (d, TT)       previous input block (block t-1)
    t = pl.program_id(1)

    @pl.when(t > 0)
    def _compute():
        cur = carry_ref[...]        # (d, TT): main window of output tile t-1
        nxt = x_ref[0]              # (d, TT): supplies the (k-1)*delta halo

        def shifted(off):
            # window[:, off : off + TT] assembled from carry + current block
            if off == 0:
                return cur
            return jnp.concatenate([cur[:, off:], nxt[:, :off]], axis=1)

        # Fused dilated conv: a single MXU contraction over k*d.
        xcat = jnp.concatenate([shifted(j * delta) for j in range(k)], axis=0)
        acc = jnp.dot(w_ref[...], xcat,
                      preferred_element_type=jnp.float32)     # (2d, TT) f32
        acc = acc + b_ref[...]                                # bias broadcast

        h1 = acc[:d, :]
        h2 = acc[d:, :]
        gate = jax.nn.sigmoid(h1)                             # f32
        xres = shifted(left_pad).astype(jnp.float32)          # residual (f32 math)
        o_ref[0] = (gate * h2 + (1.0 - gate) * xres).astype(o_ref.dtype)

    # Stash the current block: it is the main window of the next output tile.
    carry_ref[...] = x_ref[0]


def highway_block(x_ncw, v, g, bias, *, k, delta, causal=False,
                  compute_dtype=jnp.bfloat16, time_tile=512):
    """x_ncw: (B, d, T) float32, PyTorch NCW layout.

    v:    (2d, d, k)  weight-norm direction (Conv1d weight layout)
    g:    (2d,)       weight-norm magnitude
    bias: (2d,)
    """
    B, d, T = x_ncw.shape
    halo = (k - 1) * delta
    if causal:
        left_pad = halo
    else:
        if halo % 2 != 0:
            raise ValueError(
                "'same' padding requires (k-1)*delta to be even; the PyTorch "
                "module changes the sequence length otherwise.")
        left_pad = halo // 2

    # Weight norm (f32): w[o, c, j] = g[o] * v[o, c, j] / ||v[o]||_F
    v32 = v.astype(jnp.float32)
    v_norm = jnp.sqrt(jnp.sum(v32 * v32, axis=(1, 2), keepdims=True))
    w = g.astype(jnp.float32)[:, None, None] * v32 / v_norm        # (2d, d, k)
    # Fused tap matrix: w_cat[o, j*d + c] = w[o, c, j]   -> (2d, k*d)
    w_cat = jnp.transpose(w, (0, 2, 1)).reshape(2 * d, k * d).astype(compute_dtype)
    b2 = bias.astype(jnp.float32).reshape(2 * d, 1)

    # Lane-aligned time tile, at least as wide as the conv halo.
    tt = ((max(min(T, time_tile), halo, 1) + 127) // 128) * 128
    nt = -(-T // tt)                      # number of output tiles
    total_in = (nt + 1) * tt              # one extra input block for the halo
    right_pad = total_in - left_pad - T
    x_pad = jnp.pad(x_ncw, ((0, 0), (0, 0), (left_pad, right_pad)))
    x_pad = x_pad.astype(compute_dtype)   # pad + bf16 cast in one wrapper op

    kernel = functools.partial(_highway_kernel, k=k, delta=delta, d=d,
                               left_pad=left_pad)

    out_padded = pl.pallas_call(
        kernel,
        out_shape=jax.ShapeDtypeStruct((B, d, nt * tt), jnp.float32),
        grid_spec=pltpu.PrefetchScalarGridSpec(
            num_scalar_prefetch=0,
            grid=(B, nt + 1),
            in_specs=[
                pl.BlockSpec((1, d, tt), lambda b, t: (b, 0, t)),
                pl.BlockSpec((2 * d, k * d), lambda b, t: (0, 0)),
                pl.BlockSpec((2 * d, 1), lambda b, t: (0, 0)),
            ],
            out_specs=pl.BlockSpec(
                (1, d, tt), lambda b, t: (b, 0, jnp.maximum(t - 1, 0))),
            scratch_shapes=[pltpu.VMEM((d, tt), compute_dtype)],
        ),
        compiler_params=pltpu.CompilerParams(
            dimension_semantics=("parallel", "arbitrary")),
    )(x_pad, w_cat, b2)

    # Trim the (lane-aligned) padded tail; layout already NCW.
    return out_padded[:, :, :T]


def _reference(x_ncw, v, g, bias, *, k, delta, causal=False):
    """Pure-JAX reference mirroring weight-normed nn.Conv1d + highway gate."""
    B, d, T = x_ncw.shape
    v_norm = jnp.sqrt(jnp.sum(v ** 2, axis=(1, 2), keepdims=True))
    w = g[:, None, None] * v / v_norm                        # (2d, d, k)
    pad = (k - 1) * delta if causal else (k - 1) * delta // 2
    L = jax.lax.conv_general_dilated(
        x_ncw, w, window_strides=(1,), padding=[(pad, pad)],
        rhs_dilation=(delta,),
        dimension_numbers=("NCH", "OIH", "NCH"))
    L = L + bias[None, :, None]
    if causal and (k - 1) * delta > 0:
        L = L[:, :, : -((k - 1) * delta)]
    H1, H2 = L[:, :d, :], L[:, d:, :]
    sig = jax.nn.sigmoid(H1)
    return sig * H2 + (1.0 - sig) * x_ncw


if __name__ == "__main__":
    B, d, T = 2, 4, 16
    k, delta = 3, 2

    key = jax.random.PRNGKey(0)
    kx, kv, kg, kb = jax.random.split(key, 4)
    x = jax.random.normal(kx, (B, d, T), dtype=jnp.float32)
    v = jax.random.normal(kv, (2 * d, d, k), dtype=jnp.float32) * 0.3
    g = jax.random.uniform(kg, (2 * d,), dtype=jnp.float32,
                           minval=0.5, maxval=1.5)
    bias = jax.random.normal(kb, (2 * d,), dtype=jnp.float32) * 0.1

    # 1) f32 conv operands: tight parity with the PyTorch math.
    out_f32 = jax.block_until_ready(
        highway_block(x, v, g, bias, k=k, delta=delta, causal=False,
                      compute_dtype=jnp.float32))
    ref = _reference(x, v, g, bias, k=k, delta=delta, causal=False)
    assert out_f32.shape == x.shape
    assert jnp.allclose(out_f32, ref, atol=1e-4, rtol=1e-4), (
        float(jnp.max(jnp.abs(out_f32 - ref))))

    # 2) bf16 conv operands (optimized DMA/MXU path), f32 accumulate + gate.
    out_bf16 = jax.block_until_ready(
        highway_block(x, v, g, bias, k=k, delta=delta, causal=False,
                      compute_dtype=jnp.bfloat16))
    assert jnp.allclose(out_bf16, ref, atol=5e-2, rtol=5e-2), (
        float(jnp.max(jnp.abs(out_bf16 - ref))))

    # 3) causal padding variant.
    out_causal = jax.block_until_ready(
        highway_block(x, v, g, bias, k=k, delta=delta, causal=True,
                      compute_dtype=jnp.float32))
    ref_causal = _reference(x, v, g, bias, k=k, delta=delta, causal=True)
    assert jnp.allclose(out_causal, ref_causal, atol=1e-4, rtol=1e-4), (
        float(jnp.max(jnp.abs(out_causal - ref_causal))))

    print("KERNEL_OK")
</pallas_src>

<mosaic_0001>
module attributes {stable_mosaic.version = 11 : i64} {
  func.func @_highway_kernel(%arg0: i32, %arg1: i32, %arg2: memref<1x4x128xf32, #tpu.memory_space<vmem>>, %arg3: memref<8x12xf32, #tpu.memory_space<vmem>>, %arg4: memref<8x1xf32, #tpu.memory_space<vmem>>, %arg5: memref<1x4x128xf32, #tpu.memory_space<vmem>>, %arg6: memref<4x128xf32, #tpu.memory_space<vmem>>) attributes {dimension_semantics = [#tpu.dimension_semantics<parallel>, #tpu.dimension_semantics<arbitrary>], iteration_bounds = array<i64: 2, 2>, scalar_prefetch = 0 : i64, scratch_operands = 1 : i64, tpu.core_type = #tpu.core_type<tc>, window_params = [{transform_indices = @transform_0, window_bounds = array<i64: 1, 4, 128>}, {pipeline_mode = #tpu.pipeline_mode<synchronous>, transform_indices = @transform_1, window_bounds = array<i64: 8, 12>}, {pipeline_mode = #tpu.pipeline_mode<synchronous>, transform_indices = @transform_2, window_bounds = array<i64: 8, 1>}, {transform_indices = @transform_3, window_bounds = array<i64: 1, 4, 128>}]} {
    %c0_i32 = arith.constant 0 : i32
    %0 = arith.cmpi sgt, %arg1, %c0_i32 : i32
    %1 = arith.extui %0 : i1 to i32
    %c0_i32_0 = arith.constant 0 : i32
    %2 = arith.cmpi ne, %1, %c0_i32_0 : i32
    scf.if %2 {
      %c0_5 = arith.constant 0 : index
      %c0_6 = arith.constant 0 : index
      %6 = vector.load %arg6[%c0_5, %c0_6] : memref<4x128xf32, #tpu.memory_space<vmem>>, vector<4x128xf32>
      %c0_7 = arith.constant 0 : index
      %c0_8 = arith.constant 0 : index
      %c0_9 = arith.constant 0 : index
      %7 = vector.load %arg2[%c0_7, %c0_8, %c0_9] : memref<1x4x128xf32, #tpu.memory_space<vmem>>, vector<1x4x128xf32>
      %8 = vector.shape_cast %7 : vector<1x4x128xf32> to vector<4x128xf32>
      %9 = vector.extract_strided_slice %6 {offsets = [0, 2], sizes = [4, 126], strides = [1, 1]} : vector<4x128xf32> to vector<4x126xf32>
      %10 = vector.extract_strided_slice %8 {offsets = [0, 0], sizes = [4, 2], strides = [1, 1]} : vector<4x128xf32> to vector<4x2xf32>
      %11 = tpu.concatenate %9, %10 in 1 : vector<4x126xf32>, vector<4x2xf32> -> vector<4x128xf32>
      %12 = vector.extract_strided_slice %6 {offsets = [0, 4], sizes = [4, 124], strides = [1, 1]} : vector<4x128xf32> to vector<4x124xf32>
      %13 = vector.extract_strided_slice %8 {offsets = [0, 0], sizes = [4, 4], strides = [1, 1]} : vector<4x128xf32> to vector<4x4xf32>
      %14 = tpu.concatenate %12, %13 in 1 : vector<4x124xf32>, vector<4x4xf32> -> vector<4x128xf32>
      %15 = tpu.concatenate %6, %11, %14 in 0 : vector<4x128xf32>, vector<4x128xf32>, vector<4x128xf32> -> vector<12x128xf32>
      %c0_10 = arith.constant 0 : index
      %c0_11 = arith.constant 0 : index
      %16 = vector.load %arg3[%c0_10, %c0_11] : memref<8x12xf32, #tpu.memory_space<vmem>>, vector<8x12xf32>
      %cst = arith.constant dense<0.000000e+00> : vector<8x128xf32>
      %17 = tpu.matmul %16, %15, %cst {dimension_numbers = #tpu.dot_dimension_numbers<[1], [0], [0], [1], [0, 0, 1, 1], [], []>} : vector<8x12xf32>, vector<12x128xf32>, vector<8x128xf32> -> vector<8x128xf32>
      %c0_12 = arith.constant 0 : index
      %c0_13 = arith.constant 0 : index
      %18 = vector.load %arg4[%c0_12, %c0_13] : memref<8x1xf32, #tpu.memory_space<vmem>>, vector<8x1xf32>
      %19 = vector.broadcast %18 : vector<8x1xf32> to vector<8x128xf32>
      %20 = arith.addf %17, %19 : vector<8x128xf32>
      %21 = vector.extract_strided_slice %20 {offsets = [0, 0], sizes = [4, 128], strides = [1, 1]} : vector<8x128xf32> to vector<4x128xf32>
      %22 = vector.extract_strided_slice %20 {offsets = [4, 0], sizes = [4, 128], strides = [1, 1]} : vector<8x128xf32> to vector<4x128xf32>
      %23 = arith.negf %21 : vector<4x128xf32>
      %24 = math.exp %23 : vector<4x128xf32>
      %cst_14 = arith.constant 1.000000e+00 : f32
      %25 = vector.broadcast %cst_14 : f32 to vector<4x128xf32>
      %26 = arith.addf %25, %24 : vector<4x128xf32>
      %27 = arith.divf %25, %26 : vector<4x128xf32>
      %28 = vector.extract_strided_slice %6 {offsets = [0, 2], sizes = [4, 126], strides = [1, 1]} : vector<4x128xf32> to vector<4x126xf32>
      %29 = vector.extract_strided_slice %8 {offsets = [0, 0], sizes = [4, 2], strides = [1, 1]} : vector<4x128xf32> to vector<4x2xf32>
      %30 = tpu.concatenate %28, %29 in 1 : vector<4x126xf32>, vector<4x2xf32> -> vector<4x128xf32>
      %31 = arith.mulf %27, %22 : vector<4x128xf32>
      %cst_15 = arith.constant 1.000000e+00 : f32
      %32 = vector.broadcast %cst_15 : f32 to vector<4x128xf32>
      %33 = arith.subf %32, %27 : vector<4x128xf32>
      %34 = arith.mulf %33, %30 : vector<4x128xf32>
      %35 = arith.addf %31, %34 : vector<4x128xf32>
      %c0_16 = arith.constant 0 : index
      %c0_17 = arith.constant 0 : index
      %c0_18 = arith.constant 0 : index
      %36 = vector.load %arg5[%c0_16, %c0_17, %c0_18] : memref<1x4x128xf32, #tpu.memory_space<vmem>>, vector<1x4x128xf32>
      %37 = vector.shape_cast %36 : vector<1x4x128xf32> to vector<4x128xf32>
      %38 = vector.shape_cast %35 : vector<4x128xf32> to vector<1x4x128xf32>
      tpu.vector_store %arg5[%c0_16, %c0_17, %c0_18], %38 {strides = array<i32>} : memref<1x4x128xf32, #tpu.memory_space<vmem>>, vector<1x4x128xf32>,
    } else {
    }
    %c0 = arith.constant 0 : index
    %c0_1 = arith.constant 0 : index
    %c0_2 = arith.constant 0 : index
    %3 = vector.load %arg2[%c0, %c0_1, %c0_2] : memref<1x4x128xf32, #tpu.memory_space<vmem>>, vector<1x4x128xf32>
    %4 = vector.shape_cast %3 : vector<1x4x128xf32> to vector<4x128xf32>
    %c0_3 = arith.constant 0 : index
    %c0_4 = arith.constant 0 : index
    %5 = vector.load %arg6[%c0_3, %c0_4] : memref<4x128xf32, #tpu.memory_space<vmem>>, vector<4x128xf32>
    tpu.vector_store %arg6[%c0_3, %c0_4], %4 {strides = array<i32>} : memref<4x128xf32, #tpu.memory_space<vmem>>, vector<4x128xf32>,
    return
  }
  func.func @transform_0(%arg0: i32, %arg1: i32) -> (i32, i32, i32) {
    %c0_i32 = arith.constant 0 : i32
    %c0_i32_0 = arith.constant 0 : i32
    return %arg0, %c0_i32, %arg1 : i32, i32, i32
  }
  func.func @transform_1(%arg0: i32, %arg1: i32) -> (i32, i32) {
    %c0_i32 = arith.constant 0 : i32
    %c0_i32_0 = arith.constant 0 : i32
    %c0_i32_1 = arith.constant 0 : i32
    return %c0_i32, %c0_i32_0 : i32, i32
  }
  func.func @transform_2(%arg0: i32, %arg1: i32) -> (i32, i32) {
    %c0_i32 = arith.constant 0 : i32
    %c0_i32_0 = arith.constant 0 : i32
    %c0_i32_1 = arith.constant 0 : i32
    return %c0_i32, %c0_i32_0 : i32, i32
  }
  func.func @transform_3(%arg0: i32, %arg1: i32) -> (i32, i32, i32) {
    %c1_i32 = arith.constant 1 : i32
    %0 = arith.subi %arg1, %c1_i32 : i32
    %c0_i32 = arith.constant 0 : i32
    %1 = arith.maxsi %0, %c0_i32 : i32
    %c0_i32_0 = arith.constant 0 : i32
    %c0_i32_1 = arith.constant 0 : i32
    return %arg0, %c0_i32_0, %1 : i32, i32, i32
  }
}

</mosaic_0001>

<bundles_post_ra>
// kernel: tpu_custom_call.1
= control target key start
LH: loop header
LB: loop body
LE: loop exit
PB: predicated region body
PF: predicated region fallthrough
CT: control target
= control target key end

     0   :  { %8 = vsyncpa [#allocation4], 0  ;;  %s1019_s0 = inlined_call_operand.hbm [shape: f32[2,4,256], index: 0, kind: input, shape index: {}]   ;;  %s1020_s1 = inlined_call_operand.vmem [shape: f32[8,12], index: 1, kind: input, shape index: {}]   ;;  %s1021_s2 = inlined_call_operand.vmem [shape: f32[8,1], index: 2, kind: input, shape index: {}]   ;;  %s1022_s3 = inlined_call_operand.hbm [shape: f32[2,4,128], index: 3, kind: output, shape index: {}]  }
   0x1   :  { %10 = vsyncpa [#allocation4 + $0x1], 0 }
   0x2   :  { %11 = vsyncpa [#allocation5], 0 }
   0x3   :  { %13 = vsyncpa [#allocation5 + $0x1], 0  ;;  %s782_s12 = smov 0   ;;  %s784_s13 = smov 0  }
   0x4   :  { %s786_s14 = smov 0   ;;  %s788_s15 = smov 0  }
   0x5   :  { %s790_s16 = smov 0   ;;  %s792_s17 = smov 0  }
   0x6   :  { %s794_s18 = smov 0   ;;  %s796_s19 = smov 0  }
   0x7   :  { %s798_s20 = smov 0   ;;  %s800_s21 = smov 0  }
   0x8   :  { %s802_s22 = smov 0  }
   0x9 LB: > { %s444_s23 = sadd.s32 4294967295, %s751_s22   ;;  %s445_s24 = sadd.s32 4294967294, %s751_s22   ;;  %s751_s22 = sphi %s802_s22, %s19_s22   ;;  %s747_s21 = sphi %s800_s21, %s1048_s21   ;;  %s743_s20 = sphi %s798_s20, %s1047_s20   ;;  %s739_s19 = sphi %s796_s19, %s1046_s19   ;;  %s735_s18 = sphi %s794_s18, %s1045_s18   ;;  %s731_s17 = sphi %s792_s17, %s1044_s17   ;;  %s727_s16 = sphi %s790_s16, %s1043_s16   ;;  %s723_s15 = sphi %s788_s15, %s1042_s15   ;;  %s719_s14 = sphi %s786_s14, %s1041_s14   ;;  %s715_s13 = sphi %s784_s13, %s1040_s13   ;;  %s711_s12 = sphi %s782_s12, %s1039_s12  }
   0xa   : > { %s28_s25 = sadd.s32 1, %s743_s20  ;;  %s31_s26 = sadd.s32 1, %s747_s21 }
   0xb   : > { %p29_p0 = scmp.ge.s32.totalorder %s28_s25, 2  ;;  %s40_s27 = sadd.s32 1, %s731_s17 }
   0xc   : > { %p47_p1 = scmp.ne.s32.totalorder %s731_s17, %s727_s16  ;;  %p48_p2 = scmp.eq.s32.totalorder %s751_s22, 0 }
   0xd   : > { %s1050_s25 = smov (%p29_p0, %s28_s25), 0  ;;  %s1052_s26 = smov (!%p29_p0, %s31_s26), %s747_s21 }
   0xe   : > { %1026 = sst [smem:[#allocation9_spill]] %s1050_s25  ;;  %s36_s28 = ssub.s32 %s743_s20, %s1050_s25 }
   0xf   : > { %p848_p3 = por %p48_p2, %p47_p1  ;;  %p33_p4 = scmp.ge.s32.totalorder %s1052_s26, 2 }
  0x10   : > { %p53_p5 = scmp.ne.s32.totalorder %s727_s16, %s723_s15  ;;  %p54_p6 = scmp.eq.s32.totalorder %s444_s23, 0 }
  0x11   : > { %s1054_s26 = smov (%p33_p4, %s1052_s26), 0  ;;  %s116_s6 = sadd.s32 1, %s719_s14 }
  0x12   : > { %1028 = sst [smem:[#allocation10_spill]] %s1054_s26  ;;  %p855_p7 = por %p54_p6, %p53_p5 }
  0x13   : > { %s35_s4 = ssub.s32 %s747_s21, %s1054_s26  ;;  %p126_p9 = scmp.ne.s32.totalorder %s719_s14, %s715_s13 }
  0x14   : > { %s37_s5 = sor.u32 %s36_s28, %s35_s4  ;;  %p127_p10 = scmp.eq.s32.totalorder %s444_s23, 3 }
  0x15   : > { %p38_p8 = scmp.eq.s32.totalorder %s37_s5, 0  ;;  %p132_p11 = scmp.ne.s32.totalorder %s715_s13, %s711_s12 }
  0x16   : > { %p869_p12 = por %p127_p10, %p126_p9  ;;  %p114_p13 = scmp.eq.s32.totalorder %s35_s4, 0 }
  0x17   : > { %s863_s7 = scalar_select %p38_p8, %s731_s17, %s40_s27  }
  0x18   : > { %s1030_s8 = scalar_select %p869_p12, 1, 0 }
  0x19   : > { %p133_p0 = scmp.eq.s32.totalorder %s445_s24, 3  ;;  %p491_p1 = scmp.lt.s32.totalorder %s751_s22, 4 }
  0x1a   : > { %s875_s9 = scalar_select %p114_p13, %s719_s14, %s116_s6  }
  0x1b   : > { %p877_p2 = por %p133_p0, %p132_p11  ;;  %s159_s11 = sand.u32 1, %s731_s17  }
  0x1c   : > { %s450_s15 = sshll.u32 %s159_s11, 2  ;;  %s451_s23 = sshll.u32 %s747_s21, 1 }
  0x1d   : > { %s1031_s10 = scalar_select %p877_p2, 1, 0 }
  0x1e   : > { %s168_s27 = sadd.s32 %s743_s20, %s451_s23  ;;  %s163_s28 = scalar_lea.vmem [#allocation3], %s450_s15 }
  0x1f   : > { %s172_s5 = sshll.u32 %s163_s28, 4  ;;  %s452_s26 = sshll.u32 %s168_s27, 6  ;;  %s884_s5 = int_to_ptr.vmem [resolvable:$true] %s172_s5 }
  0x20   : > { %s889_s24 = scalar_lea.hbm %s1019_s0, %s452_s26  ;;  %p893_p4 = pnand %p491_p1, %p848_p3 }
  0x21   : > { %s160_s15 = scalar_lea.sflag [#allocation4], %s159_s11  ;;  %s599_s23 = scalar_lea.hbm %s889_s24, 64 }
  0x22   : > { %p600_p8 = scmp.ne.s32.totalorder %s889_s24, %s599_s23  ;;  %p601_p9 = pneg %p893_p4 }
  0x23   : > { %s604_s29 = scalar_lea.hbm %s1019_s0, 256  ;;  %p605_p3 = scmp.lt.u32.totalorder %s889_s24, %s1019_s0 }
  0x24   : > { %p602_p10 = pnand %p601_p9, %p600_p8  ;;  %p606_p13 = scmp.lt.u32.totalorder %s604_s29, %s599_s23 }
  0x25   : > { %p608_p1 = scmp.lt.u32.totalorder %s599_s23, %s889_s24 }
  0x26   : > { %p603_p11 = pneg %p602_p10  ;;  %p607_p0 = por %p606_p13, %p605_p3 }
  0x28   : > { %p609_p5 = por %p608_p1, %p607_p0 }
  0x2a   : > { %p610_p6 = pnand %p609_p5, %p603_p11 }
  0x2c   : > { %613 = shalt.err (!%p610_p6)
}
  0x2d   : > { %s614_s11 = scalar_lea.vmem %s884_s5, 64  ;;  %s753_s4 = smov [#allocation3]  }
  0x2e   : > { %p615_p8 = scmp.ne.s32.totalorder %s884_s5, %s614_s11  ;;  %s619_s25 = sshll.u32 %s753_s4, 4  ;;  %s620_s25 = int_to_ptr.vmem [resolvable:$false] %s619_s25 }
  0x2f   : > { %s621_s26 = scalar_lea.vmem %s620_s25, 128  ;;  %p622_p12 = scmp.lt.s32.totalorder %s884_s5, %s620_s25 }
  0x30   : > { %p617_p10 = pnand %p615_p8, %p601_p9  ;;  %p623_p3 = scmp.lt.s32.totalorder %s621_s26, %s614_s11 }
  0x32   : > { %p618_p2 = pneg %p617_p10  ;;  %p624_p13 = por %p623_p3, %p622_p12 }
  0x34   : > { %p625_p0 = pnand %p624_p13, %p618_p2 }
  0x36   : > { %628 = shalt.err (!%p625_p0)
}
  0x37   : > { %486 = dma.hbm_to_vmem [thread:$0]  (!%p893_p4), %s889_s24, 64, %s884_s5, %s160_s15  }
  0x38   : > { %p1033_p5 = scmp.lt.s32.totalorder %s751_s22, 5  ;;  %p1034_p6 = scmp.ge.s32.totalorder %s751_s22, 1 }
  0x3a   : > { %p178_p9 = pnand %p1034_p6, %p1033_p5 }
  0x3b   : > { %s183_s23 = sand.u32 (!%p178_p9), 1, %s727_s16  }
  0x3c   : > { %181 = sbr.rel (%p178_p9) target bundleno = 472 (0x1d8), region = 32  ;;  %s929_s29 = sshll.u32 (!%p178_p9), %s183_s23, 2 }
  0x3d   : > { %s184_s27 = scalar_lea.sflag (!%p178_p9), [#allocation4], %s183_s23  ;;  %s187_s28 = scalar_lea.vmem (!%p178_p9), [#allocation3], %s929_s29 }
  0x43   : > { %702 = dma.done.wait (%p855_p7), %s184_s27, 64  }
  0x44   : > { %704 = vsyncadd (%p855_p7), %s184_s27, 4294967232  ;;  %s207_s5 = sand.u32 1, %s715_s13   ;;  %p456_p12 = scmp.le.s32.totalorder %s735_s18, 0 }
  0x45   : > { %s939_s24 = sshll.u32 %s207_s5, 2  ;;  %v217_v0 = vld [vmem:[#allocation2] sm:$0xf] (!%p456_p12)  ;;  %v218_v1 = vld [vmem:[%s187_s28] sm:$0xf] (!%p456_p12)  ;;  %s754_s15 = smov (!%p456_p12), 126  }
  0x46   : > { %s209_s6 = scalar_lea.vmem [#allocation6], %s939_s24  ;;  %216 = sbr.rel (%p456_p12) target bundleno = 445 (0x1bd), region = 40  ;;  %220 = vrot.lane.b32.xlu0 (!%p456_p12), %v217_v0, %s754_s15  ;;  %v588_v2 = vpack.i.bf16 (!%p456_p12), %v218_v1, %v217_v0  ;;  %v755_v3 = vmov (!%p456_p12), 0.0|0.0   ;;  %vm757_vm0 = vmmov (!%p456_p12), 0   ;;  %v758_v4 = vmov (!%p456_p12), 0.0   ;;  %v243_v6 = vld [vmem:[%s1021_s2] sm:$0xff] (!%p456_p12) }
  0x47   : > { %475 = vmatprep.subr.bf16.mxu0 (!%p456_p12), %v755_v3  ;;  %s756_s30 = smov (!%p456_p12), 124   ;;  %472 = vmatprep.mubr.msk.f32.mxu0 (!%p456_p12), %vm757_vm0, %v758_v4  ;;  %v759_v5 = vmov (!%p456_p12), 0   ;;  %vm227_vm1 = vcmask (!%p456_p12), 1031168   ;;  %vm235_vm2 = vcmask (!%p456_p12), 1014784   ;;  %vm240_vm3 = vcmask (!%p456_p12), 1043456   ;;  %v242_v17 = vld [vmem:[%s1020_s1] sm:$0xff] (!%p456_p12) }
  0x48   : > { %589 = vrot.lane.b32.xlu1 (!%p456_p12), %v588_v2, %s756_s30  ;;  %594 = vset.pattern.permute.xlu0 (!%p456_p12), %v759_v5  ;;  %vm760_vm4 = vmmov (!%p456_p12), 1   ;;  %vm249_vm6 = vcmask (!%p456_p12), 97280  }
  0x49   : > { %593 = vset.pattern.permute.xlu1 (!%p456_p12), %v759_v5  ;;  %vm477_vm5 = vmpackc.low (!%p456_p12), %vm240_vm3, %vm760_vm4 }
  0x4a   : > { %224 = vrot.lane.b32.xlu0 (!%p456_p12), %v218_v1, %s754_s15 }
  0x4c   : > { %246 = vperm.xlu1 (!%p456_p12), %593, %v243_v6  }
  0xb8   : > { %v221_v7 = vpop.permute.xlu0 %220 }
  0xba   : > { %v590_v8 = vpop.permute.xlu1 %589 }
  0xbb   : > { %v592_v9 = vunpack.i.h.bf16 %v590_v8  ;;  %v591_v10 = vunpack.i.l.bf16 %v590_v8 }
  0xbc   : > { %v225_v11 = vpop.permute.xlu0 %224 }
  0xbd   : > { %v228_v12 = vsel %vm227_vm1, %v221_v7, %v225_v11  ;;  %v236_v14 = vsel %vm235_vm2, %v591_v10, %v592_v9 }
  0xbe   : > { %v238_v13 = vrot.slane %v228_v12, 4 }
  0xc0   : > { %v241_v15 = vsel %vm240_vm3, %v217_v0, %v238_v13 }
  0xc1   : > { %v476_v16 = vpack.c.bf16 %v236_v14, %v241_v15 }
  0xc3   : > { %478 = vmatpush3.bf16.msk.msra.mxu0 %vm477_vm5, %v476_v16 }
  0xc6   : > { %473 = vmatmul.mubr.msk.f32.vlgmr.msra.gmra.mrb[0].mxu0 %vm249_vm6, %v242_v17 }
  0xcb   : > { %v247_v18 = vpop.permute.xlu1 %246 }
 0x199   : > { %v322_v19 = vpop.f32.mrb[0].mxu0 }
 0x19a   : > { %v323_v20 = vadd.f32 %v322_v19, %v247_v18  ;;  %v474_v21 = vpop.f32.mrb[1].mxu0 }
 0x19c   : > { %v459_v22 = vmul.f32 -1.442695, %v323_v20  ;;  %v333_v26 = vrot.slane %v323_v20, 4 }
 0x19e   : > { %595 = vpow2.f32 %v459_v22 }
 0x1a8   : > { %v596_v23 = vpop.eup %595 }
 0x1a9   : > { %v329_v24 = vadd.f32 1.0, %v596_v23 }
 0x1ab   : > { %597 = vrcp.f32 %v329_v24 }
 0x1b5   : > { %v598_v25 = vpop.eup %597 }
 0x1b6   : > { %v336_v27 = vsub.f32 1.0, %v598_v25  ;;  %v335_v28 = vmul.f32 %v598_v25, %v333_v26 }
 0x1b8   : > { %v337_v29 = vmul.f32 %v336_v27, %v228_v12 }
 0x1ba   : > { %v338_v30 = vadd.f32 %v337_v29, %v335_v28 }
 0x1bc   : > { %339 = vst [vmem:[%s209_s6] sm:$0xf] %v338_v30 }
 0x1bd PF: > { %v340_v31 = vld [vmem:[%s187_s28] sm:$0xf]  ;;  %s461_s23 = sadd.s32 4294967295, %s735_s18  ;;  %s360_s27 = sshll.u32 %s209_s6, 4  ;;  %s959_s27 = int_to_ptr.vmem [resolvable:$true] %s360_s27 }
 0x1be   : > { %341 = vst [vmem:[#allocation2] sm:$0xf] %v340_v31  ;;  %p351_p7 = scmp.gt.s32.totalorder %s461_s23, 0  ;;  %s343_s25 = scalar_lea.sflag [#allocation5], %s207_s5 }
 0x1bf   : > { %s629_s28 = scalar_lea.vmem %s959_s27, 64  ;;  %p1035_p4 = scmp.ne.s32.totalorder %s1030_s8, 0 }
 0x1c0   : > { %s1056_s23 = smov (!%p351_p7, %s461_s23), 0  ;;  %p630_p2 = scmp.ne.s32.totalorder %s959_s27, %s629_s28 }
 0x1c1   : > { %s356_s15 = sadd.s32 %s739_s19, %s1056_s23  ;;  %s761_s18 = smov [#allocation6]  }
 0x1c2   : > { %s462_s30 = sshll.u32 %s356_s15, 6  ;;  %p631_p11 = pnand %p630_p2, %p1035_p4 }
 0x1c3   : > { %s358_s4 = scalar_lea.hbm %s1022_s3, %s462_s30  ;;  %s633_s24 = sshll.u32 %s761_s18, 4  ;;  %s634_s24 = int_to_ptr.vmem [resolvable:$false] %s633_s24 }
 0x1c4   : > { %p632_p1 = pneg %p631_p11  ;;  %s635_s19 = scalar_lea.vmem %s634_s24, 128 }
 0x1c5   : > { %p636_p8 = scmp.lt.s32.totalorder %s959_s27, %s634_s24  ;;  %p637_p10 = scmp.lt.s32.totalorder %s635_s19, %s629_s28 }
 0x1c7   : > { %p638_p3 = por %p637_p10, %p636_p8 }
 0x1c9   : > { %p639_p13 = pnand %p638_p3, %p632_p1 }
 0x1cb   : > { %642 = shalt.err (!%p639_p13)
}
 0x1cc   : > { %s643_s6 = scalar_lea.hbm %s358_s4, 64  ;;  %s647_s23 = scalar_lea.hbm %s1022_s3, 128 }
 0x1cd   : > { %p644_p0 = scmp.ne.s32.totalorder %s358_s4, %s643_s6  ;;  %p648_p9 = scmp.lt.u32.totalorder %s358_s4, %s1022_s3 }
 0x1ce   : > { %p649_p12 = scmp.lt.u32.totalorder %s647_s23, %s643_s6  ;;  %p651_p2 = scmp.lt.u32.totalorder %s643_s6, %s358_s4 }
 0x1cf   : > { %p645_p5 = pnand %p644_p0, %p1035_p4 }
 0x1d0   : > { %p650_p7 = por %p649_p12, %p648_p9 }
 0x1d1   : > { %p646_p6 = pneg %p645_p5 }
 0x1d2   : > { %p652_p11 = por %p651_p2, %p650_p7 }
 0x1d4   : > { %p653_p1 = pnand %p652_p11, %p646_p6 }
 0x1d6   : > { %656 = shalt.err (!%p653_p1)
}
 0x1d7   : > { %481 = dma.vmem_to_hbm [thread:$0]  (%p1035_p4), %s959_s27, 64, %s358_s4, %s343_s25  }
 0x1d8 PF: > { %p492_p8 = scmp.ge.s32.totalorder %s751_s22, 2  ;;  %s372_s29 = sand.u32 1, %s711_s12  }
 0x1d9   : > { %p1036_p10 = scmp.ne.s32.totalorder %s1031_s10, 0  ;;  %s373_s11 = scalar_lea.sflag [#allocation5], %s372_s29 }
 0x1db   : > { %p488_p3 = pnand %p492_p8, %p1036_p10 }
 0x1dd   : > { %706 = dma.done.wait (!%p488_p3), %s373_s11, 64  }
 0x1de   : > { %708 = vsyncadd (!%p488_p3), %s373_s11, 4294967232  ;;  %s19_s22 = sadd.s32 1, %s751_s22   ;;  %s1037_s8 = sld [smem:[#allocation9_spill]] }
 0x1df   : > { %p16_p13 = scmp.ge.s32.totalorder %s19_s22, 6   ;;  %s1038_s27 = sld [smem:[#allocation10_spill]] }
 0x1e0   : > { %s1039_s12 = smov %s715_s13  ;;  %s1040_s13 = smov %s719_s14 }
 0x1e1   : > { %s1041_s14 = smov %s875_s9  ;;  %s1042_s15 = smov %s727_s16 }
 0x1e2   : > { %s1043_s16 = smov %s731_s17  ;;  %s1044_s17 = smov %s863_s7 }
 0x1e3   : > { %s1045_s18 = smov %s743_s20  ;;  %s1046_s19 = smov %s747_s21 }
 0x1e4   : > { %s1047_s20 = smov %s1037_s8  ;;  %18 = sbr.rel (!%p16_p13) target bundleno = 9 (0x9), region = 81 }
 0x1e5   : > { %s1048_s21 = smov %s1038_s27 }
 0x1eb   :  { %378 = vsyncpa [#allocation4], 1 }
 0x1ec   :  { %380 = vsyncpa [#allocation4 + $0x1], 1 }
 0x1ed   :  { %381 = vsyncpa [#allocation5], 1 }
 0x1ee   :  { %383 = vsyncpa [#allocation5 + $0x1], 1 }

</bundles_post_ra>
